<compile_context>
chip_gen: v5e
topology: v5e:2x2
jax: 0.10.0
libtpu: 0.0.40
codegen_flags: <defaults>
</compile_context>

<pallas_src>
import functools

import jax
import jax.numpy as jnp
from jax.experimental import pallas as pl
from jax.experimental.pallas import tpu as pltpu


def _round_up(x, m):
    return (x + m - 1) // m * m


# ----------------------------- Pallas kernel ------------------------------- #
def _conv_tap_kernel(x_ref, w_ref, t_ref, o_ref, *, tk, wd, oh, alpha):
    """Direct conv as a tap-reduction of shifted-band MXU matmuls.

    x_ref: (1, Lx, Cd)        bf16 row-major flattened (padded) input image
    w_ref: (tk*tk, Cd, Cop)   bf16 per-tap weights (scale pre-folded)
    t_ref: (1, Cop)           f32  per-channel shift (bias / folded BN)
    o_ref: (1, oh*wd, Cop)    output (junk columns >= OW sliced off outside)
    """
    m = oh * wd
    cop = o_ref.shape[-1]
    acc = jnp.zeros((m, cop), jnp.float32)
    for kh in range(tk):
        for kw in range(tk):
            off = kh * wd + kw                       # static element offset
            xs = x_ref[0, off:off + m, :]            # (m, Cd) shifted band
            acc = acc + jnp.dot(xs, w_ref[kh * tk + kw],
                                preferred_element_type=jnp.float32)
    z = acc + t_ref[...]                             # per-channel affine shift
    if alpha != 1.0:
        z = jnp.where(z > 0.0, z, alpha * z)         # LeakyReLU
    o_ref[0] = z.astype(o_ref.dtype)


# ----------------------------- XLA-level glue ------------------------------ #
def _space_to_depth2(x):
    """[N, H, W, C] -> [N, H/2, W/2, 4C]  (H, W even).  Channel order (ph,pw,c)."""
    n, h, w, c = x.shape
    x = x.reshape(n, h // 2, 2, w // 2, 2, c)
    x = jnp.transpose(x, (0, 1, 3, 2, 4, 5))
    return x.reshape(n, h // 2, w // 2, 4 * c)


def _weights_to_s2d(w):
    """(4,4,Cin,Cout) -> (2,2,4*Cin,Cout) matching _space_to_depth2 ordering."""
    _, _, cin, cout = w.shape
    w = w.reshape(2, 2, 2, 2, cin, cout)             # (dh, ph, dw, pw, ci, co)
    w = jnp.transpose(w, (0, 2, 1, 3, 4, 5))         # (dh, dw, ph, pw, ci, co)
    return w.reshape(2, 2, 4 * cin, cout)


def fused_conv_layer(x_nhwc, w_hwio, scale, shift, *, stride, alpha,
                     out_dtype=jnp.bfloat16):
    """4x4 conv (pad=1, stride 1|2) + per-channel affine + LeakyReLU."""
    N, H, W, _ = x_nhwc.shape
    KH, KW, _, Cout = w_hwio.shape
    assert (KH, KW) == (4, 4) and stride in (1, 2)

    OH = (H + 2 - KH) // stride + 1
    OW = (W + 2 - KW) // stride + 1

    # Fold scale into the weights, pad Cout up to a multiple of 128 so the
    # kernel's output lane dim is dense (unmasked vst).
    Coutp = max(128, _round_up(Cout, 128))
    w_f = (w_hwio.astype(jnp.float32)
           * scale.astype(jnp.float32)[None, None, None, :])
    w_f = jnp.pad(w_f, ((0, 0), (0, 0), (0, 0), (0, Coutp - Cout)))
    shift_p = jnp.pad(shift.astype(jnp.float32),
                      (0, Coutp - Cout)).reshape(1, Coutp)

    x = x_nhwc.astype(jnp.bfloat16)                  # bf16 matmul inputs

    if stride == 2:
        # Zero-pad to an even size with one slack row for the band trick,
        # then space-to-depth: k4/s2 conv == k2/s1 conv on 4*Cin channels.
        Hp, Wp = 2 * (OH + 2), 2 * (OW + 1)
        xp = jnp.pad(x, ((0, 0), (1, Hp - H - 1), (1, Wp - W - 1), (0, 0)))
        xd = _space_to_depth2(xp)
        wt = _weights_to_s2d(w_f)                    # (2, 2, 4*Cin, Coutp)
        tk = 2
    else:
        xp = jnp.pad(x, ((0, 0), (1, 2), (1, 1), (0, 0)))   # 1 slack row
        xd = xp
        wt = w_f                                     # (4, 4, Cin, Coutp)
        tk = 4

    _, Hd, Wd, Cd = xd.shape
    x_flat = xd.reshape(N, Hd * Wd, Cd)              # free (contiguous) reshape
    w_taps = wt.reshape(tk * tk, Cd, Coutp).astype(jnp.bfloat16)

    out = pl.pallas_call(
        functools.partial(_conv_tap_kernel, tk=tk, wd=Wd, oh=OH, alpha=alpha),
        out_shape=jax.ShapeDtypeStruct((N, OH * Wd, Coutp), out_dtype),
        grid=(N,),
        in_specs=[
            pl.BlockSpec((1, Hd * Wd, Cd), lambda n: (n, 0, 0)),
            pl.BlockSpec((tk * tk, Cd, Coutp), lambda n: (0, 0, 0)),
            pl.BlockSpec((1, Coutp), lambda n: (0, 0)),
        ],
        out_specs=pl.BlockSpec((1, OH * Wd, Coutp), lambda n: (n, 0, 0)),
        compiler_params=pltpu.CompilerParams(
            dimension_semantics=("parallel",),
            vmem_limit_bytes=48 * 1024 * 1024),
    )(x_flat, w_taps, shift_p)

    # Un-flatten, drop junk columns (>= OW) and padded output channels.
    return out.reshape(N, OH, Wd, Coutp)[:, :, :OW, :Cout]


# --------------------------- parameter construction ------------------------ #
def init_patch_discriminator_params(key, input_nc, ndf=64, n_layers=3):
    """Deterministic synthetic parameters mirroring the PyTorch module shapes."""
    eps = 1e-5
    layers = []

    def conv_w(k, cin, cout):
        return 0.05 * jax.random.normal(k, (4, 4, cin, cout), jnp.float32)

    keys = jax.random.split(key, 4 * (n_layers + 2))
    ki = iter(range(len(keys)))

    # layer 0: conv with bias, no norm, LeakyReLU(0.2)
    w = conv_w(keys[next(ki)], input_nc, ndf)
    b = 0.05 * jax.random.normal(keys[next(ki)], (ndf,), jnp.float32)
    layers.append(dict(w=w, scale=jnp.ones((ndf,), jnp.float32), shift=b,
                       stride=2, alpha=0.2))

    nf_mult = 1
    for n in range(1, n_layers + 1):
        nf_mult_prev = nf_mult
        nf_mult = min(2 ** n, 8)
        cin, cout = ndf * nf_mult_prev, ndf * nf_mult
        stride = 2 if n < n_layers else 1
        w = conv_w(keys[next(ki)], cin, cout)
        # BatchNorm (inference): fold gamma/beta/running stats into scale/shift
        kg, kb, km, kv = jax.random.split(keys[next(ki)], 4)
        gamma = 1.0 + 0.1 * jax.random.normal(kg, (cout,), jnp.float32)
        beta = 0.1 * jax.random.normal(kb, (cout,), jnp.float32)
        rmean = 0.1 * jax.random.normal(km, (cout,), jnp.float32)
        rvar = 1.0 + 0.1 * jax.random.uniform(kv, (cout,), jnp.float32)
        scl = gamma / jnp.sqrt(rvar + eps)
        layers.append(dict(w=w, scale=scl, shift=beta - rmean * scl,
                           stride=stride, alpha=0.2))

    # final: conv to 1 channel with bias, no norm, no activation
    cin = ndf * nf_mult
    w = conv_w(keys[next(ki)], cin, 1)
    b = 0.05 * jax.random.normal(keys[next(ki)], (1,), jnp.float32)
    layers.append(dict(w=w, scale=jnp.ones((1,), jnp.float32), shift=b,
                       stride=1, alpha=1.0))
    return layers


# --------------------------------- forward --------------------------------- #
def patch_discriminator_forward(x_nchw, layers):
    """x_nchw: [N, C, H, W] float32 -> [N, 1, H', W'] (PatchGAN logits)."""
    x = jnp.transpose(x_nchw, (0, 2, 3, 1))          # NCHW -> NHWC
    for i, lyr in enumerate(layers):
        last = i == len(layers) - 1
        x = fused_conv_layer(x, lyr["w"], lyr["scale"], lyr["shift"],
                             stride=lyr["stride"], alpha=lyr["alpha"],
                             out_dtype=jnp.float32 if last else jnp.bfloat16)
    return jnp.transpose(x, (0, 3, 1, 2))            # NHWC -> NCHW


# --------------------------- pure-JAX reference ----------------------------- #
def reference_forward(x_nchw, layers):
    x = jnp.transpose(x_nchw, (0, 2, 3, 1)).astype(jnp.float32)
    for lyr in layers:
        z = jax.lax.conv_general_dilated(
            x, lyr["w"], window_strides=(lyr["stride"], lyr["stride"]),
            padding=((1, 1), (1, 1)),
            dimension_numbers=("NHWC", "HWIO", "NHWC"))
        z = z * lyr["scale"] + lyr["shift"]
        x = jnp.where(z > 0.0, z, lyr["alpha"] * z)
    return jnp.transpose(x, (0, 3, 1, 2))


# ----------------------------------- main ----------------------------------- #
if __name__ == "__main__":
    key = jax.random.PRNGKey(0)
    k_x, k_p = jax.random.split(key)

    # Spatial path: 32 -> 16 -> 8 -> 4 -> 3 -> 2
    N, input_nc, H, W = 2, 3, 32, 32
    ndf, n_layers = 16, 3

    x = jax.random.normal(k_x, (N, input_nc, H, W), jnp.float32)
    params = init_patch_discriminator_params(k_p, input_nc, ndf, n_layers)

    out = jax.block_until_ready(patch_discriminator_forward(x, params))
    ref = jax.block_until_ready(reference_forward(x, params))

    assert out.shape == (N, 1, 2, 2), out.shape
    assert jnp.all(jnp.isfinite(out))
    err = float(jnp.max(jnp.abs(out.astype(jnp.float32) - ref)))
    tol = 3e-2 * (1.0 + float(jnp.max(jnp.abs(ref))))   # bf16-matmul tolerance
    assert err < tol, (err, tol)
    print("KERNEL_OK")
</pallas_src>

<mosaic_0001>
module attributes {stable_mosaic.version = 11 : i64} {
  func.func @_conv_tap_kernel(%arg0: i32, %arg1: memref<1x306x12xbf16, #tpu.memory_space<vmem>>, %arg2: memref<4x12x128xbf16, #tpu.memory_space<vmem>>, %arg3: memref<1x128xf32, #tpu.memory_space<vmem>>, %arg4: memref<1x272x128xbf16, #tpu.memory_space<vmem>>) attributes {dimension_semantics = [#tpu.dimension_semantics<parallel>], iteration_bounds = array<i64: 2>, scalar_prefetch = 0 : i64, scratch_operands = 0 : i64, tpu.core_type = #tpu.core_type<tc>, window_params = [{transform_indices = @transform_0, window_bounds = array<i64: 1, 306, 12>}, {pipeline_mode = #tpu.pipeline_mode<synchronous>, transform_indices = @transform_1, window_bounds = array<i64: 4, 12, 128>}, {pipeline_mode = #tpu.pipeline_mode<synchronous>, transform_indices = @transform_2, window_bounds = array<i64: 1, 128>}, {transform_indices = @transform_3, window_bounds = array<i64: 1, 272, 128>}]} {
    %cst = arith.constant 0.000000e+00 : f32
    %0 = vector.broadcast %cst : f32 to vector<272x128xf32>
    %c0 = arith.constant 0 : index
    %c0_0 = arith.constant 0 : index
    %c0_1 = arith.constant 0 : index
    %1 = vector.load %arg1[%c0, %c0_0, %c0_1] : memref<1x306x12xbf16, #tpu.memory_space<vmem>>, vector<1x272x12xbf16>
    %2 = vector.shape_cast %1 : vector<1x272x12xbf16> to vector<272x12xbf16>
    %c0_2 = arith.constant 0 : index
    %c0_3 = arith.constant 0 : index
    %c0_4 = arith.constant 0 : index
    %3 = vector.load %arg2[%c0_2, %c0_3, %c0_4] : memref<4x12x128xbf16, #tpu.memory_space<vmem>>, vector<1x12x128xbf16>
    %4 = vector.shape_cast %3 : vector<1x12x128xbf16> to vector<12x128xbf16>
    %cst_5 = arith.constant dense<0.000000e+00> : vector<272x128xf32>
    %5 = tpu.matmul %2, %4, %cst_5 {dimension_numbers = #tpu.dot_dimension_numbers<[1], [0], [0], [1], [0, 0, 1, 1], [], []>} : vector<272x12xbf16>, vector<12x128xbf16>, vector<272x128xf32> -> vector<272x128xf32>
    %6 = arith.addf %0, %5 : vector<272x128xf32>
    %c0_6 = arith.constant 0 : index
    %c1 = arith.constant 1 : index
    %c0_7 = arith.constant 0 : index
    %7 = vector.load %arg1[%c0_6, %c1, %c0_7] : memref<1x306x12xbf16, #tpu.memory_space<vmem>>, vector<1x272x12xbf16>
    %8 = vector.shape_cast %7 : vector<1x272x12xbf16> to vector<272x12xbf16>
    %c1_8 = arith.constant 1 : index
    %c0_9 = arith.constant 0 : index
    %c0_10 = arith.constant 0 : index
    %9 = vector.load %arg2[%c1_8, %c0_9, %c0_10] : memref<4x12x128xbf16, #tpu.memory_space<vmem>>, vector<1x12x128xbf16>
    %10 = vector.shape_cast %9 : vector<1x12x128xbf16> to vector<12x128xbf16>
    %cst_11 = arith.constant dense<0.000000e+00> : vector<272x128xf32>
    %11 = tpu.matmul %8, %10, %cst_11 {dimension_numbers = #tpu.dot_dimension_numbers<[1], [0], [0], [1], [0, 0, 1, 1], [], []>} : vector<272x12xbf16>, vector<12x128xbf16>, vector<272x128xf32> -> vector<272x128xf32>
    %12 = arith.addf %6, %11 : vector<272x128xf32>
    %c0_12 = arith.constant 0 : index
    %c17 = arith.constant 17 : index
    %c0_13 = arith.constant 0 : index
    %13 = vector.load %arg1[%c0_12, %c17, %c0_13] : memref<1x306x12xbf16, #tpu.memory_space<vmem>>, vector<1x272x12xbf16>
    %14 = vector.shape_cast %13 : vector<1x272x12xbf16> to vector<272x12xbf16>
    %c2 = arith.constant 2 : index
    %c0_14 = arith.constant 0 : index
    %c0_15 = arith.constant 0 : index
    %15 = vector.load %arg2[%c2, %c0_14, %c0_15] : memref<4x12x128xbf16, #tpu.memory_space<vmem>>, vector<1x12x128xbf16>
    %16 = vector.shape_cast %15 : vector<1x12x128xbf16> to vector<12x128xbf16>
    %cst_16 = arith.constant dense<0.000000e+00> : vector<272x128xf32>
    %17 = tpu.matmul %14, %16, %cst_16 {dimension_numbers = #tpu.dot_dimension_numbers<[1], [0], [0], [1], [0, 0, 1, 1], [], []>} : vector<272x12xbf16>, vector<12x128xbf16>, vector<272x128xf32> -> vector<272x128xf32>
    %18 = arith.addf %12, %17 : vector<272x128xf32>
    %c0_17 = arith.constant 0 : index
    %c18 = arith.constant 18 : index
    %c0_18 = arith.constant 0 : index
    %19 = vector.load %arg1[%c0_17, %c18, %c0_18] : memref<1x306x12xbf16, #tpu.memory_space<vmem>>, vector<1x272x12xbf16>
    %20 = vector.shape_cast %19 : vector<1x272x12xbf16> to vector<272x12xbf16>
    %c3 = arith.constant 3 : index
    %c0_19 = arith.constant 0 : index
    %c0_20 = arith.constant 0 : index
    %21 = vector.load %arg2[%c3, %c0_19, %c0_20] : memref<4x12x128xbf16, #tpu.memory_space<vmem>>, vector<1x12x128xbf16>
    %22 = vector.shape_cast %21 : vector<1x12x128xbf16> to vector<12x128xbf16>
    %cst_21 = arith.constant dense<0.000000e+00> : vector<272x128xf32>
    %23 = tpu.matmul %20, %22, %cst_21 {dimension_numbers = #tpu.dot_dimension_numbers<[1], [0], [0], [1], [0, 0, 1, 1], [], []>} : vector<272x12xbf16>, vector<12x128xbf16>, vector<272x128xf32> -> vector<272x128xf32>
    %24 = arith.addf %18, %23 : vector<272x128xf32>
    %c0_22 = arith.constant 0 : index
    %c0_23 = arith.constant 0 : index
    %25 = vector.load %arg3[%c0_22, %c0_23] : memref<1x128xf32, #tpu.memory_space<vmem>>, vector<1x128xf32>
    %26 = vector.broadcast %25 : vector<1x128xf32> to vector<272x128xf32>
    %27 = arith.addf %24, %26 : vector<272x128xf32>
    %cst_24 = arith.constant 0.000000e+00 : f32
    %28 = vector.broadcast %cst_24 : f32 to vector<272x128xf32>
    %29 = arith.cmpf ogt, %27, %28 : vector<272x128xf32>
    %cst_25 = arith.constant 2.000000e-01 : f32
    %30 = vector.broadcast %cst_25 : f32 to vector<272x128xf32>
    %31 = arith.mulf %30, %27 : vector<272x128xf32>
    %32 = arith.select %29, %27, %31 : vector<272x128xi1>, vector<272x128xf32>
    %33 = arith.truncf %32 : vector<272x128xf32> to vector<272x128xbf16>
    %c0_26 = arith.constant 0 : index
    %c0_27 = arith.constant 0 : index
    %c0_28 = arith.constant 0 : index
    %34 = vector.load %arg4[%c0_26, %c0_27, %c0_28] : memref<1x272x128xbf16, #tpu.memory_space<vmem>>, vector<1x272x128xbf16>
    %35 = vector.shape_cast %34 : vector<1x272x128xbf16> to vector<272x128xbf16>
    %36 = vector.shape_cast %33 : vector<272x128xbf16> to vector<1x272x128xbf16>
    tpu.vector_store %arg4[%c0_26, %c0_27, %c0_28], %36 {strides = array<i32>} : memref<1x272x128xbf16, #tpu.memory_space<vmem>>, vector<1x272x128xbf16>,
    return
  }
  func.func @transform_0(%arg0: i32) -> (i32, i32, i32) {
    %c0_i32 = arith.constant 0 : i32
    %c0_i32_0 = arith.constant 0 : i32
    %c0_i32_1 = arith.constant 0 : i32
    return %arg0, %c0_i32, %c0_i32_0 : i32, i32, i32
  }
  func.func @transform_1(%arg0: i32) -> (i32, i32, i32) {
    %c0_i32 = arith.constant 0 : i32
    %c0_i32_0 = arith.constant 0 : i32
    %c0_i32_1 = arith.constant 0 : i32
    %c0_i32_2 = arith.constant 0 : i32
    return %c0_i32, %c0_i32_0, %c0_i32_1 : i32, i32, i32
  }
  func.func @transform_2(%arg0: i32) -> (i32, i32) {
    %c0_i32 = arith.constant 0 : i32
    %c0_i32_0 = arith.constant 0 : i32
    %c0_i32_1 = arith.constant 0 : i32
    return %c0_i32, %c0_i32_0 : i32, i32
  }
  func.func @transform_3(%arg0: i32) -> (i32, i32, i32) {
    %c0_i32 = arith.constant 0 : i32
    %c0_i32_0 = arith.constant 0 : i32
    %c0_i32_1 = arith.constant 0 : i32
    return %arg0, %c0_i32, %c0_i32_0 : i32, i32, i32
  }
}

</mosaic_0001>

<bundles_post_ra>
// kernel: tpu_custom_call.1
= control target key start
LH: loop header
LB: loop body
LE: loop exit
PB: predicated region body
PF: predicated region fallthrough
CT: control target
= control target key end

     0   :  { %8 = vsyncpa [#allocation3], 0  ;;  %s2607_s0 = inlined_call_operand.vmem [shape: bf16[2,306,12], index: 0, kind: input, shape index: {}]   ;;  %s2608_s1 = inlined_call_operand.vmem [shape: bf16[4,12,128], index: 1, kind: input, shape index: {}]   ;;  %s2609_s2 = inlined_call_operand.vmem [shape: f32[1,128], index: 2, kind: input, shape index: {}]   ;;  %s2610_s3 = inlined_call_operand.hbm [shape: bf16[2,272,128], index: 3, kind: output, shape index: {}]  }
   0x1   :  { %10 = vsyncpa [#allocation3 + $0x1], 0  ;;  %s2207_s12 = smov 0   ;;  %s2209_s13 = smov 0  }
   0x2   :  { %s2211_s14 = smov 0   ;;  %s2213_s15 = smov 0  }
   0x3 LB: > { %s2228_s16 = sadd.s32 4294967295, %s2183_s15   ;;  %s1699_s17 = sadd.s32 4294967294, %s2183_s15   ;;  %s2183_s15 = sphi %s2213_s15, %s2616_s15   ;;  %s2179_s14 = sphi %s2211_s14, %s2615_s14   ;;  %s2175_s13 = sphi %s2209_s13, %s2614_s13   ;;  %s2171_s12 = sphi %s2207_s12, %s2613_s12  }
   0x4   : > { %s2232_s18 = sadd.s32 1, %s2183_s15   ;;  %s91_s19 = sadd.s32 1, %s2179_s14 }
   0x5   : > { %s88_s20 = ssub.s32 %s2183_s15, %s2232_s18  ;;  %p101_p0 = scmp.ne.s32.totalorder %s2179_s14, %s2175_s13 }
   0x6   : > { %p89_p1 = scmp.eq.s32.totalorder %s88_s20, 0  ;;  %p102_p2 = scmp.eq.s32.totalorder %s2228_s16, 1 }
   0x7   : > { %p107_p3 = scmp.ne.s32.totalorder %s2175_s13, %s2171_s12  ;;  %p108_p4 = scmp.eq.s32.totalorder %s1699_s17, 1 }
   0x8   : > { %s2243_s21 = scalar_select %p89_p1, %s2179_s14, %s91_s19  }
   0x9   : > { %p2245_p5 = por %p102_p2, %p101_p0  ;;  %p2249_p6 = por %p108_p4, %p107_p3 }
   0xa   : > { %p1702_p7 = scmp.ge.s32.totalorder %s2183_s15, 1  ;;  %p140_p8 = scmp.lt.s32.totalorder %s2183_s15, 3 }
   0xc   : > { %p141_p9 = pnand %p1702_p7, %p140_p8 }
   0xd   : > { %p164_p10 = scmp.lt.s32.totalorder (!%p141_p9), %s2228_s16, 1  ;;  %s161_s29 = sand.u32 (!%p141_p9), 1, %s2175_s13  }
   0xe   : > { %144 = sbr.rel (%p141_p9) target bundleno = 446 (0x1be), region = 32 }
   0xf   : > { %s2075_s30 = smul.u32 (!%p141_p9), 136, %s161_s29 }
  0x10   : > { %s2077_s7 = smul.u32 (!%p141_p9), 136, %s2228_s16 }
  0x11   : > { %s2408_s4 = scalar_lea.vmem (!%p141_p9), [#allocation2], %s2075_s30 }
  0x12   : > { %s1633_s10 = scalar_lea.hbm (!%p141_p9), %s2610_s3, %s2077_s7  ;;  %s1634_s11 = sshll.u32 (!%p141_p9), %s2408_s4, 4  ;;  %s1635_s11 = int_to_ptr.vmem [resolvable:$true] %s1634_s11 }
  0x13   : > { %v1797_v0 = vld [vmem:[%s2608_s1] sm:$0xf]  ;;  %v1946_v1 = vld [vmem:[%s2608_s1] sm:$0x30]  ;;  %vm496_vm0 = vcmask 1045504   ;;  %s165_s5 = scalar_select %p164_p10, %s2228_s16, 1 }
  0x14   : > { %v1798_v2 = vor.u32 %v1946_v1, %v1797_v0  ;;  %v1907_v3 = vld [vmem:[%s2608_s1 + $0x18] sm:$0xf]  ;;  %v1965_v4 = vld [vmem:[%s2608_s1 + $0x18] sm:$0x30]  ;;  %v1884_v6 = vld [vmem:[%s2608_s1 + $0x10] sm:$0xf] }
  0x15   : > { %v1908_v5 = vor.u32 %v1965_v4, %v1907_v3  ;;  %v1964_v7 = vld [vmem:[%s2608_s1 + $0x10] sm:$0x30]  ;;  %v1776_v10 = vld [vmem:[%s2608_s1 + $0x8] sm:$0xf]  ;;  %v1947_v11 = vld [vmem:[%s2608_s1 + $0x8] sm:$0x30] }
  0x16   : > { %v634_v8 = vsel %vm496_vm0, %v1798_v2, 0  ;;  %v1885_v9 = vor.u32 %v1964_v7, %v1884_v6  ;;  %s2076_s20 = smul.u32 156, %s165_s5  ;;  %v1777_v13 = vor.u32 %v1947_v11, %v1776_v10  ;;  %vm444_vm1 = vcmask 97280   ;;  %s1636_s17 = sshll.u32 %s1633_s10, 4  ;;  %s1637_s17 = int_to_ptr.hbm [resolvable:$true] %s1636_s17 }
  0x17   : > { %643 = vmatpush.bf16.msra.mxu1 %v634_v8  ;;  %v1283_v12 = vsel %vm496_vm0, %v1908_v5, 0  ;;  %vm1190_vm2 = vcmask 1046528   ;;  %vm298_vm3 = vsmask.f32 7424  ;;  %s1622_s16 = scalar_lea.sflag [#allocation3], %s161_s29  ;;  %s2135_s19 = sshra.s32 %s1637_s17, 4  ;;  %s2136_s19 = int_to_ptr.hbm [resolvable:$true] %s2135_s19 }
  0x18   : > { %1292 = vmatpush.bf16.msra.mxu3 %v1283_v12  ;;  %v1053_v14 = vsel %vm496_vm0, %v1885_v9, 0  ;;  %s2287_s26 = scalar_lea.vmem %s2607_s0, %s2076_s20  ;;  %v498_v15 = vsel %vm496_vm0, %v1777_v13, 0  ;;  %s2137_s20 = scalar_lea.hbm %s2136_s19, 136 }
  0x19   : > { %1062 = vmatpush.bf16.msra.mxu2 %v1053_v14  ;;  %v1929_v16 = vld [vmem:[%s2287_s26] sm:$0xff]  ;;  %v2056_v17 = vld [vmem:[%s2287_s26 + $0x8] sm:$0xf0]  ;;  %v1948_v18 = vld [vmem:[%s2287_s26 + $0x10] sm:$0xff]  ;;  %507 = vmatpush.bf16.msra.mxu0 %v498_v15  ;;  %p2138_p11 = scmp.ne.s32.totalorder %s2136_s19, %s2137_s20  ;;  %p2142_p0 = scmp.lt.s32.totalorder %s2136_s19, %s2610_s3 }
  0x1a   : > { %v2057_v19 = vld [vmem:[%s2287_s26 + $0x8] sm:$0xe]  ;;  %v302_v22 = vshll.u32 %v1929_v16, 16  ;;  %1799 = vmatmul.msk.bf16.vlgmr.msra.gmra.mxu1 %vm444_vm1, %v1929_v16  ;;  %v1192_v24 = vrot.slane %v1948_v18, 1  ;;  %v864_v27 = vshll.u32 %v1948_v18, 16  ;;  %v300_v28 = vshrl.u32 %v1929_v16, 16 }
  0x1b   : > { %v2055_v20 = vld [vmem:[%s2287_s26 + $0x8] sm:$0xff]   ;;  %v2058_v23 = vor.u32 %v2057_v19, %v2056_v17  ;;  %v1931_v40 = vld [vmem:[%s2287_s26 + $0x10] sm:$0xff]  ;;  %v1949_v41 = vld [vmem:[%s2287_s26 + $0x18] sm:$0xff]  ;;  %v868_v44 = vshrl.u32 %v1948_v18, 16  ;;  %p2139_p12 = pnand %p2138_p11, %p2245_p5 }
  0x1c   : > { %v1930_v21 = vld [vmem:[%s2287_s26 + $0x8] sm:$0xff]  ;;  %v857_v25 = vshrl.u32 %v2055_v20, 16  ;;  %v859_v26 = vshll.u32 %v2055_v20, 16  ;;  %v304_v31 = vrot.slane %v302_v22, 1  ;;  %v866_v33 = vrot.slane %v864_v27, 1  ;;  %v1932_v54 = vld [vmem:[%s2287_s26 + $0x18] sm:$0xff] }
  0x1d   : > { %v307_v29 = vshll.u32 %v1930_v21, 16  ;;  %v1191_v30 = vrot.slane %v2058_v23, 1  ;;  %v311_v42 = vshrl.u32 %v1930_v21, 16  ;;  %v315_v43 = vshll.u32 %v1931_v40, 16  ;;  %v1950_v55 = vld [vmem:[%s2287_s26 + $0x20] sm:$0xff]  ;;  %v1951_v5 = vld [vmem:[%s2287_s26 + $0x28] sm:$0xff]  ;;  %p2140_p13 = pneg %p2139_p12 }
  0x1e   : > { %v861_v32 = vrot.slane %v859_v26, 1  ;;  %v305_v36 = vor.u32 %v304_v31, %v300_v28  ;;  %v872_v45 = vshll.u32 %v1949_v41, 16  ;;  %v1194_v46 = vrot.slane %v1949_v41, 1  ;;  %v1933_v4 = vld [vmem:[%s2287_s26 + $0x20] sm:$0xff]  ;;  %v1934_v18 = vld [vmem:[%s2287_s26 + $0x28] sm:$0xff]  ;;  %v1952_v19 = vld [vmem:[%s2287_s26 + $0x30] sm:$0xff] }
  0x1f   : > { %v309_v34 = vrot.slane %v307_v29, 1  ;;  %v1193_v35 = vsel %vm1190_vm2, %v1191_v30, %v1192_v24  ;;  %v317_v48 = vrot.slane %v315_v43, 1  ;;  %v870_v49 = vor.u32 %v868_v44, %v866_v33 }
  0x20   : > { %1909 = vmatmul.msk.bf16.vlgmr.msra.gmra.mxu3 %vm444_vm1, %v1193_v35  ;;  %v862_v37 = vor.u32 %v861_v32, %v857_v25  ;;  %v874_v50 = vrot.slane %v872_v45, 1  ;;  %v1195_v51 = vsel %vm1190_vm2, %v1192_v24, %v1194_v46  ;;  %v319_v56 = vshrl.u32 %v1931_v40, 16  ;;  %v1935_v32 = vld [vmem:[%s2287_s26 + $0x30] sm:$0xff] }
  0x21   : > { %v310_v38 = vsel %vm298_vm3, %v305_v36, %v309_v34  ;;  %v313_v47 = vor.u32 %v311_v42, %v309_v34  ;;  %v323_v57 = vshll.u32 %v1932_v54, 16  ;;  %v876_v58 = vshrl.u32 %v1949_v41, 16 }
  0x22   : > { %v867_v39 = vsel %vm298_vm3, %v862_v37, %v866_v33  ;;  %1778 = vmatmul.msk.bf16.vlgmr.msra.gmra.mxu0 %vm444_vm1, %v310_v38  ;;  %v875_v53 = vsel %vm298_vm3, %v870_v49, %v874_v50  ;;  %v880_v59 = vshll.u32 %v1950_v55, 16  ;;  %v1196_v60 = vrot.slane %v1950_v55, 1  ;;  %v1953_v33 = vld [vmem:[%s2287_s26 + $0x38] sm:$0xff] }
  0x23   : > { %1886 = vmatmul.msk.bf16.vlgmr.msra.gmra.mxu2 %vm444_vm1, %v867_v39  ;;  %v318_v52 = vsel %vm298_vm3, %v313_v47, %v317_v48  ;;  %v321_v61 = vor.u32 %v319_v56, %v317_v48  ;;  %v325_v62 = vrot.slane %v323_v57, 1  ;;  %v878_v63 = vor.u32 %v876_v58, %v874_v50  ;;  %v1954_v47 = vld [vmem:[%s2287_s26 + $0x40] sm:$0xff] }
  0x24   : > { %v882_v0 = vrot.slane %v880_v59, 1  ;;  %v1197_v1 = vsel %vm1190_vm2, %v1194_v46, %v1196_v60  ;;  %v327_v6 = vshrl.u32 %v1932_v54, 16  ;;  %v331_v7 = vshll.u32 %v1933_v4, 16  ;;  %v1936_v46 = vld [vmem:[%s2287_s26 + $0x38] sm:$0xff] }
  0x25   : > { %v326_v2 = vsel %vm298_vm3, %v321_v61, %v325_v62  ;;  %v884_v8 = vshrl.u32 %v1950_v55, 16  ;;  %v888_v9 = vshll.u32 %v1951_v5, 16  ;;  %v1198_v10 = vrot.slane %v1951_v5, 1  ;;  %v1955_v61 = vld [vmem:[%s2287_s26 + $0x48] sm:$0xff] }
  0x26   : > { %v883_v3 = vsel %vm298_vm3, %v878_v63, %v882_v0  ;;  %v329_v11 = vor.u32 %v327_v6, %v325_v62  ;;  %v333_v12 = vrot.slane %v331_v7, 1  ;;  %v335_v20 = vshrl.u32 %v1933_v4, 16 }
  0x27   : > { %v886_v13 = vor.u32 %v884_v8, %v882_v0  ;;  %v890_v14 = vrot.slane %v888_v9, 1  ;;  %v1199_v15 = vsel %vm1190_vm2, %v1196_v60, %v1198_v10  ;;  %v892_v22 = vshrl.u32 %v1951_v5, 16  ;;  %v1937_v60 = vld [vmem:[%s2287_s26 + $0x40] sm:$0xff] }
  0x28   : > { %v334_v16 = vsel %vm298_vm3, %v329_v11, %v333_v12  ;;  %v896_v23 = vshll.u32 %v1952_v19, 16  ;;  %v1200_v24 = vrot.slane %v1952_v19, 1  ;;  %v337_v25 = vor.u32 %v335_v20, %v333_v12  ;;  %v1956_v11 = vld [vmem:[%s2287_s26 + $0x50] sm:$0xff] }
  0x29   : > { %v891_v17 = vsel %vm298_vm3, %v886_v13, %v890_v14  ;;  %v894_v27 = vor.u32 %v892_v22, %v890_v14  ;;  %v343_v34 = vshrl.u32 %v1934_v18, 16  ;;  %v347_v35 = vshll.u32 %v1935_v32, 16 }
  0x2a   : > { %1800 = vmatmul.msk.bf16.gmra.mxu1 %vm444_vm1, %v1930_v21  ;;  %v339_v21 = vshll.u32 %v1934_v18, 16  ;;  %v898_v28 = vrot.slane %v896_v23, 1  ;;  %v1201_v29 = vsel %vm1190_vm2, %v1198_v10, %v1200_v24  ;;  %v900_v36 = vshrl.u32 %v1952_v19, 16  ;;  %v1938_v10 = vld [vmem:[%s2287_s26 + $0x48] sm:$0xff] }
  0x2b   : > { %v904_v37 = vshll.u32 %v1953_v33, 16  ;;  %v1202_v38 = vrot.slane %v1953_v33, 1  ;;  %v351_v48 = vshrl.u32 %v1935_v32, 16  ;;  %v355_v49 = vshll.u32 %v1936_v46, 16 }
  0x2c   : > { %v341_v26 = vrot.slane %v339_v21, 1  ;;  %v899_v31 = vsel %vm298_vm3, %v894_v27, %v898_v28  ;;  %v902_v41 = vor.u32 %v900_v36, %v898_v28  ;;  %v908_v50 = vshrl.u32 %v1953_v33, 16 }
  0x2d   : > { %v906_v42 = vrot.slane %v904_v37, 1  ;;  %v1203_v43 = vsel %vm1190_vm2, %v1200_v24, %v1202_v38  ;;  %v359_v62 = vshrl.u32 %v1936_v46, 16  ;;  %v363_v63 = vshll.u32 %v1937_v60, 16 }
  0x2e   : > { %v342_v30 = vsel %vm298_vm3, %v337_v25, %v341_v26  ;;  %v345_v39 = vor.u32 %v343_v34, %v341_v26  ;;  %v916_v0 = vshrl.u32 %v1954_v47, 16  ;;  %v367_v12 = vshrl.u32 %v1937_v60, 16 }
  0x2f   : > { %v907_v45 = vsel %vm298_vm3, %v902_v41, %v906_v42  ;;  %v910_v55 = vor.u32 %v908_v50, %v906_v42  ;;  %v371_v13 = vshll.u32 %v1938_v10, 16  ;;  %v375_v34 = vshrl.u32 %v1938_v10, 16  ;;  %v2384_v41 = vld [vmem:[%s2609_s2] ss:$0 sm:$0xff] }
  0x30   : > { %1910 = vmatmul.msk.bf16.gmra.mxu3 %vm444_vm1, %v1195_v51  ;;  %v912_v51 = vshll.u32 %v1954_v47, 16  ;;  %v932_v37 = vshrl.u32 %v1956_v11, 16 }
  0x31   : > { %v373_v19 = vrot.slane %v371_v13, 1 }
  0x32   : > { %1779 = vmatmul.msk.bf16.gmra.mxu0 %vm444_vm1, %v318_v52  ;;  %v1204_v52 = vrot.slane %v1954_v47, 1  ;;  %v914_v56 = vrot.slane %v912_v51, 1 }
  0x33   : > { %1887 = vmatmul.msk.bf16.gmra.mxu2 %vm444_vm1, %v875_v53 }
  0x34   : > { %v1205_v57 = vsel %vm1190_vm2, %v1202_v38, %v1204_v52  ;;  %v915_v59 = vsel %vm298_vm3, %v910_v55, %v914_v56  ;;  %v918_v5 = vor.u32 %v916_v0, %v914_v56 }
  0x3a   : > { %1801 = vmatmul.msk.bf16.gmra.mxu1 %vm444_vm1, %v1931_v40  ;;  %v349_v40 = vrot.slane %v347_v35, 1 }
  0x3c   : > { %v350_v44 = vsel %vm298_vm3, %v345_v39, %v349_v40  ;;  %v353_v53 = vor.u32 %v351_v48, %v349_v40 }
  0x40   : > { %1911 = vmatmul.msk.bf16.gmra.mxu3 %vm444_vm1, %v1197_v1  ;;  %v920_v1 = vshll.u32 %v1955_v61, 16 }
  0x42   : > { %1780 = vmatmul.msk.bf16.gmra.mxu0 %vm444_vm1, %v326_v2  ;;  %v1206_v2 = vrot.slane %v1955_v61, 1  ;;  %v922_v6 = vrot.slane %v920_v1, 1 }
  0x43   : > { %1888 = vmatmul.msk.bf16.gmra.mxu2 %vm444_vm1, %v883_v3 }
  0x44   : > { %v1207_v7 = vsel %vm1190_vm2, %v1204_v52, %v1206_v2  ;;  %v923_v9 = vsel %vm298_vm3, %v918_v5, %v922_v6 }
  0x4a   : > { %1802 = vmatmul.msk.bf16.gmra.mxu1 %vm444_vm1, %v1932_v54  ;;  %v357_v54 = vrot.slane %v355_v49, 1 }
  0x4c   : > { %v358_v58 = vsel %vm298_vm3, %v353_v53, %v357_v54  ;;  %v361_v3 = vor.u32 %v359_v62, %v357_v54  ;;  %v2402_v62 = vld [vmem:[%s2287_s26 + $0x60] sm:$0xff] }
  0x50   : > { %1912 = vmatmul.msk.bf16.gmra.mxu3 %vm444_vm1, %v1199_v15  ;;  %v924_v15 = vshrl.u32 %v1955_v61, 16  ;;  %v2399_v61 = vld [vmem:[%s2287_s26 + $0x58] sm:$0xff] }
  0x52   : > { %1781 = vmatmul.msk.bf16.gmra.mxu0 %vm444_vm1, %v334_v16  ;;  %v928_v16 = vshll.u32 %v1956_v11, 16  ;;  %v926_v20 = vor.u32 %v924_v15, %v922_v6  ;;  %v387_v6 = vshll.u32 %v2399_v61, 16 }
  0x53   : > { %1889 = vmatmul.msk.bf16.gmra.mxu2 %vm444_vm1, %v891_v17  ;;  %v1208_v17 = vrot.slane %v1956_v11, 1  ;;  %v1212_v11 = vrot.slane %v2402_v62, 1 }
  0x54   : > { %v930_v21 = vrot.slane %v928_v16, 1  ;;  %v389_v15 = vrot.slane %v387_v6, 1 }
  0x55   : > { %v1209_v22 = vsel %vm1190_vm2, %v1206_v2, %v1208_v17 }
  0x56   : > { %v931_v25 = vsel %vm298_vm3, %v926_v20, %v930_v21 }
  0x5a   : > { %1803 = vmatmul.msk.bf16.gmra.mxu1 %vm444_vm1, %v1933_v4  ;;  %v365_v4 = vrot.slane %v363_v63, 1 }
  0x5c   : > { %v366_v8 = vsel %vm298_vm3, %v361_v3, %v365_v4 }
  0x60   : > { %1913 = vmatmul.msk.bf16.gmra.mxu3 %vm444_vm1, %v1201_v29  ;;  %v1939_v29 = vld [vmem:[%s2287_s26 + $0x50] sm:$0xff] }
  0x61   : > { %v379_v35 = vshll.u32 %v1939_v29, 16  ;;  %v383_v1 = vshrl.u32 %v1939_v29, 16 }
  0x62   : > { %1782 = vmatmul.msk.bf16.gmra.mxu0 %vm444_vm1, %v342_v30  ;;  %v2377_v30 = vld [vmem:[%s2287_s26 + $0x58] sm:$0xff] }
  0x63   : > { %1890 = vmatmul.msk.bf16.gmra.mxu2 %vm444_vm1, %v899_v31  ;;  %v936_v38 = vshll.u32 %v2377_v30, 16  ;;  %v1210_v39 = vrot.slane %v2377_v30, 1 }
  0x65   : > { %v1211_v48 = vsel %vm1190_vm2, %v1208_v17, %v1210_v39 }
  0x6a   : > { %1804 = vmatmul.msk.bf16.gmra.mxu1 %vm444_vm1, %v1934_v18  ;;  %v369_v18 = vor.u32 %v367_v12, %v365_v4 }
  0x6c   : > { %v374_v24 = vsel %vm298_vm3, %v369_v18, %v373_v19 }
  0x70   : > { %1914 = vmatmul.msk.bf16.gmra.mxu3 %vm444_vm1, %v1203_v43  ;;  %v377_v43 = vor.u32 %v375_v34, %v373_v19  ;;  %v1213_v19 = vsel %vm1190_vm2, %v1210_v39, %v1212_v11 }
  0x72   : > { %1783 = vmatmul.msk.bf16.gmra.mxu0 %vm444_vm1, %v350_v44  ;;  %v381_v44 = vrot.slane %v379_v35, 1 }
  0x73   : > { %1891 = vmatmul.msk.bf16.gmra.mxu2 %vm444_vm1, %v907_v45  ;;  %v934_v45 = vor.u32 %v932_v37, %v930_v21 }
  0x74   : > { %v382_v53 = vsel %vm298_vm3, %v377_v43, %v381_v44 }
  0x7a   : > { %1805 = vmatmul.msk.bf16.gmra.mxu1 %vm444_vm1, %v1935_v32 }
  0x80   : > { %1915 = vmatmul.msk.bf16.gmra.mxu3 %vm444_vm1, %v1205_v57 }
  0x82   : > { %1784 = vmatmul.msk.bf16.gmra.mxu0 %vm444_vm1, %v358_v58 }
  0x83   : > { %1892 = vmatmul.msk.bf16.gmra.mxu2 %vm444_vm1, %v915_v59 }
  0x8a   : > { %1806 = vmatmul.msk.bf16.gmra.mxu1 %vm444_vm1, %v1936_v46  ;;  %v938_v46 = vrot.slane %v936_v38, 1 }
  0x8c   : > { %v939_v54 = vsel %vm298_vm3, %v934_v45, %v938_v46  ;;  %v948_v45 = vshrl.u32 %v2402_v62, 16 }
  0x90   : > { %1916 = vmatmul.msk.bf16.gmra.mxu3 %vm444_vm1, %v1207_v7 }
  0x92   : > { %1785 = vmatmul.msk.bf16.gmra.mxu0 %vm444_vm1, %v366_v8 }
  0x93   : > { %1893 = vmatmul.msk.bf16.gmra.mxu2 %vm444_vm1, %v923_v9  ;;  %v940_v9 = vshrl.u32 %v2377_v30, 16 }
  0x95   : > { %v942_v16 = vor.u32 %v940_v9, %v938_v46 }
  0x97   : > { %v645_v14 = vpop.f32.mrf.mxu1 }
  0x9a   : > { %1807 = vmatmul.msk.bf16.gmra.mxu1 %vm444_vm1, %v1937_v60 }
  0x9f   : > { %v509_v23 = vpop.f32.mrf.mxu0  ;;  %v647_v26 = vpop.f32.mrf.mxu1 }
  0xa0   : > { %1917 = vmatmul.msk.bf16.gmra.mxu3 %vm444_vm1, %v1209_v22  ;;  %v646_v27 = vadd.f32 %v645_v14, %v509_v23  ;;  %v385_v14 = vor.u32 %v383_v1, %v381_v44 }
  0xa2   : > { %1786 = vmatmul.msk.bf16.gmra.mxu0 %vm444_vm1, %v374_v24  ;;  %v390_v24 = vsel %vm298_vm3, %v385_v14, %v389_v15 }
  0xa3   : > { %1894 = vmatmul.msk.bf16.gmra.mxu2 %vm444_vm1, %v931_v25  ;;  %v1294_v28 = vpop.f32.mrf.mxu3 }
  0xa6   : > { %v1064_v31 = vpop.f32.mrf.mxu2 }
  0xa7   : > { %v1149_v32 = vadd.f32 %v1064_v31, %v646_v27  ;;  %v511_v33 = vpop.f32.mrf.mxu0  ;;  %v650_v36 = vpop.f32.mrf.mxu1 }
  0xa8   : > { %v648_v47 = vadd.f32 %v647_v26, %v511_v33  ;;  %v2424_v33 = vld [vmem:[%s2287_s26 + $0x68] sm:$0xff] }
  0xa9   : > { %v1379_v40 = vadd.f32 %v1294_v28, %v1149_v32  ;;  %v2421_v32 = vld [vmem:[%s2287_s26 + $0x60] sm:$0xff]  ;;  %v952_v46 = vshll.u32 %v2424_v33, 16 }
  0xaa   : > { %1808 = vmatmul.msk.bf16.gmra.mxu1 %vm444_vm1, %v1938_v10  ;;  %v944_v10 = vshll.u32 %v2402_v62, 16 }
  0xab   : > { %v1296_v42 = vpop.f32.mrf.mxu3  ;;  %v1417_v50 = vadd.f32 %v2384_v41, %v1379_v40 }
  0xac   : > { %v946_v17 = vrot.slane %v944_v10, 1 }
  0xad   : > { %v1485_v57 = vmul.f32 0.2, %v1417_v50  ;;  %vm1451_vm4 = vcmp.gt.f32.partialorder %v1417_v50, 0.0 }
  0xae   : > { %v1066_v49 = vpop.f32.mrf.mxu2  ;;  %v947_v25 = vsel %vm298_vm3, %v942_v16, %v946_v17  ;;  %v956_v16 = vshrl.u32 %v2424_v33, 16 }
  0xaf   : > { %v1150_v51 = vadd.f32 %v1066_v49, %v648_v47  ;;  %v514_v52 = vpop.f32.mrf.mxu0  ;;  %v652_v55 = vpop.f32.mrf.mxu1  ;;  %v1519_v2 = vsel %vm1451_vm4, %v1417_v50, %v1485_v57  ;;  %v1214_v47 = vrot.slane %v2424_v33, 1 }
  0xb0   : > { %1918 = vmatmul.msk.bf16.gmra.mxu3 %vm444_vm1, %v1211_v48  ;;  %v651_v59 = vadd.f32 %v650_v36, %v514_v52  ;;  %v391_v36 = vshrl.u32 %v2399_v61, 16  ;;  %v950_v52 = vor.u32 %v948_v45, %v946_v17 }
  0xb1   : > { %v1380_v56 = vadd.f32 %v1296_v42, %v1150_v51  ;;  %v395_v42 = vshll.u32 %v2421_v32, 16 }
  0xb2   : > { %1787 = vmatmul.msk.bf16.gmra.mxu0 %vm444_vm1, %v382_v53  ;;  %v393_v50 = vor.u32 %v391_v36, %v389_v15  ;;  %v954_v53 = vrot.slane %v952_v46, 1 }
  0xb3   : > { %v1418_v58 = vadd.f32 %v2384_v41, %v1380_v56  ;;  %1895 = vmatmul.msk.bf16.gmra.mxu2 %vm444_vm1, %v939_v54  ;;  %v1299_v60 = vpop.f32.mrf.mxu3  ;;  %v397_v51 = vrot.slane %v395_v42, 1 }
  0xb5   : > { %vm1452_vm5 = vcmp.gt.f32.partialorder %v1418_v58, 0.0  ;;  %v1486_v63 = vmul.f32 0.2, %v1418_v58 }
  0xb6   : > { %v1069_v0 = vpop.f32.mrf.mxu2 }
  0xb7   : > { %v1520_v3 = vsel %vm1452_vm5, %v1418_v58, %v1486_v63  ;;  %v1151_v4 = vadd.f32 %v1069_v0, %v651_v59  ;;  %v516_v5 = vpop.f32.mrf.mxu0  ;;  %v655_v8 = vpop.f32.mrf.mxu1 }
  0xb8   : > { %v1973_v7 = vpack.c.bf16 %v1520_v3, %v1519_v2  ;;  %v653_v18 = vadd.f32 %v652_v55, %v516_v5  ;;  %v1215_v55 = vsel %vm1190_vm2, %v1212_v11, %v1214_v47  ;;  %v2446_v5 = vld [vmem:[%s2287_s26 + $0x70] sm:$0xff] }
  0xb9   : > { %v1381_v12 = vadd.f32 %v1299_v60, %v1151_v4  ;;  %v398_v60 = vsel %vm298_vm3, %v393_v50, %v397_v51  ;;  %v2443_v4 = vld [vmem:[%s2287_s26 + $0x68] sm:$0xff]  ;;  %v960_v17 = vshll.u32 %v2446_v5, 16 }
  0xba   : > { %1974 = vst [vmem:[%s2408_s4] sm:$0xff] %v1973_v7   ;;  %1809 = vmatmul.msk.bf16.gmra.mxu1 %vm444_vm1, %v1939_v29 }
  0xbb   : > { %v1301_v13 = vpop.f32.mrf.mxu3  ;;  %v1419_v21 = vadd.f32 %v2384_v41, %v1381_v12 }
  0xbd   : > { %v1487_v28 = vmul.f32 0.2, %v1419_v21  ;;  %vm1453_vm6 = vcmp.gt.f32.partialorder %v1419_v21, 0.0 }
  0xbe   : > { %v1071_v20 = vpop.f32.mrf.mxu2 }
  0xbf   : > { %v1152_v22 = vadd.f32 %v1071_v20, %v653_v18  ;;  %v519_v23 = vpop.f32.mrf.mxu0  ;;  %v657_v26 = vpop.f32.mrf.mxu1  ;;  %v1521_v37 = vsel %vm1453_vm6, %v1419_v21, %v1487_v28  ;;  %v1216_v18 = vrot.slane %v2446_v5, 1 }
  0xc0   : > { %1919 = vmatmul.msk.bf16.gmra.mxu3 %vm444_vm1, %v1213_v19  ;;  %v656_v30 = vadd.f32 %v655_v8, %v519_v23  ;;  %v399_v8 = vshrl.u32 %v2421_v32, 16  ;;  %v958_v23 = vor.u32 %v956_v16, %v954_v53 }
  0xc1   : > { %v1382_v27 = vadd.f32 %v1301_v13, %v1152_v22  ;;  %v403_v13 = vshll.u32 %v2443_v4, 16 }
  0xc2   : > { %1788 = vmatmul.msk.bf16.gmra.mxu0 %vm444_vm1, %v390_v24  ;;  %v401_v21 = vor.u32 %v399_v8, %v397_v51  ;;  %v962_v24 = vrot.slane %v960_v17, 1 }
  0xc3   : > { %v1420_v29 = vadd.f32 %v2384_v41, %v1382_v27  ;;  %1896 = vmatmul.msk.bf16.gmra.mxu2 %vm444_vm1, %v947_v25  ;;  %v1304_v31 = vpop.f32.mrf.mxu3  ;;  %v405_v22 = vrot.slane %v403_v13, 1 }
  0xc5   : > { %vm1454_vm7 = vcmp.gt.f32.partialorder %v1420_v29, 0.0  ;;  %v1488_v34 = vmul.f32 0.2, %v1420_v29 }
  0xc6   : > { %v1074_v35 = vpop.f32.mrf.mxu2 }
  0xc7   : > { %v1522_v38 = vsel %vm1454_vm7, %v1420_v29, %v1488_v34  ;;  %v1153_v39 = vadd.f32 %v1074_v35, %v656_v30  ;;  %v521_v40 = vpop.f32.mrf.mxu0  ;;  %v660_v44 = vpop.f32.mrf.mxu1 }
  0xc8   : > { %v1978_v43 = vpack.c.bf16 %v1522_v38, %v1521_v37  ;;  %v658_v54 = vadd.f32 %v657_v26, %v521_v40  ;;  %v1217_v26 = vsel %vm1190_vm2, %v1214_v47, %v1216_v18  ;;  %v2468_v40 = vld [vmem:[%s2287_s26 + $0x78] sm:$0xff] }
  0xc9   : > { %v1383_v48 = vadd.f32 %v1304_v31, %v1153_v39  ;;  %v406_v31 = vsel %vm298_vm3, %v401_v21, %v405_v22  ;;  %v2465_v39 = vld [vmem:[%s2287_s26 + $0x70] sm:$0xff] }
  0xca   : > { %2059 = vst [vmem:[%s2408_s4 + $0x8] sm:$0xff] %v1978_v43   ;;  %1810 = vmatmul.msk.bf16.gmra.mxu1 %vm444_vm1, %v2399_v61  ;;  %v955_v61 = vsel %vm298_vm3, %v950_v52, %v954_v53  ;;  %v964_v52 = vshrl.u32 %v2446_v5, 16  ;;  %v968_v53 = vshll.u32 %v2468_v40, 16 }
  0xcb   : > { %v1306_v49 = vpop.f32.mrf.mxu3  ;;  %v1421_v57 = vadd.f32 %v2384_v41, %v1383_v48 }
  0xcd   : > { %v1489_v0 = vmul.f32 0.2, %v1421_v57  ;;  %vm1455_vm8 = vcmp.gt.f32.partialorder %v1421_v57, 0.0 }
  0xce   : > { %v1076_v56 = vpop.f32.mrf.mxu2 }
  0xcf   : > { %v1154_v58 = vadd.f32 %v1076_v56, %v658_v54  ;;  %v524_v59 = vpop.f32.mrf.mxu0  ;;  %v662_v62 = vpop.f32.mrf.mxu1  ;;  %v1523_v9 = vsel %vm1455_vm8, %v1421_v57, %v1489_v0  ;;  %v1218_v54 = vrot.slane %v2468_v40, 1 }
  0xd0   : > { %1920 = vmatmul.msk.bf16.gmra.mxu3 %vm444_vm1, %v1215_v55  ;;  %v661_v2 = vadd.f32 %v660_v44, %v524_v59  ;;  %v407_v44 = vshrl.u32 %v2443_v4, 16  ;;  %v966_v59 = vor.u32 %v964_v52, %v962_v24 }
  0xd1   : > { %v1384_v63 = vadd.f32 %v1306_v49, %v1154_v58  ;;  %v411_v49 = vshll.u32 %v2465_v39, 16 }
  0xd2   : > { %1789 = vmatmul.msk.bf16.gmra.mxu0 %vm444_vm1, %v398_v60  ;;  %v409_v57 = vor.u32 %v407_v44, %v405_v22  ;;  %v970_v60 = vrot.slane %v968_v53, 1 }
  0xd3   : > { %v1422_v1 = vadd.f32 %v2384_v41, %v1384_v63  ;;  %1897 = vmatmul.msk.bf16.gmra.mxu2 %vm444_vm1, %v955_v61  ;;  %v1309_v3 = vpop.f32.mrf.mxu3  ;;  %v413_v58 = vrot.slane %v411_v49, 1 }
  0xd5   : > { %vm1456_vm9 = vcmp.gt.f32.partialorder %v1422_v1, 0.0  ;;  %v1490_v6 = vmul.f32 0.2, %v1422_v1 }
  0xd6   : > { %v1079_v7 = vpop.f32.mrf.mxu2 }
  0xd7   : > { %v1524_v10 = vsel %vm1456_vm9, %v1422_v1, %v1490_v6  ;;  %v1155_v11 = vadd.f32 %v1079_v7, %v661_v2  ;;  %v526_v12 = vpop.f32.mrf.mxu0  ;;  %v665_v15 = vpop.f32.mrf.mxu1 }
  0xd8   : > { %v1983_v14 = vpack.c.bf16 %v1524_v10, %v1523_v9  ;;  %v663_v25 = vadd.f32 %v662_v62, %v526_v12  ;;  %v1219_v62 = vsel %vm1190_vm2, %v1216_v18, %v1218_v54  ;;  %v2490_v12 = vld [vmem:[%s2287_s26 + $0x80] sm:$0xff] }
  0xd9   : > { %v1385_v19 = vadd.f32 %v1309_v3, %v1155_v11  ;;  %v414_v3 = vsel %vm298_vm3, %v409_v57, %v413_v58  ;;  %v2487_v11 = vld [vmem:[%s2287_s26 + $0x78] sm:$0xff] }
  0xda   : > { %2060 = vst [vmem:[%s2408_s4 + $0x10] sm:$0xff] %v1983_v14   ;;  %1811 = vmatmul.msk.bf16.gmra.mxu1 %vm444_vm1, %v2421_v32  ;;  %v963_v32 = vsel %vm298_vm3, %v958_v23, %v962_v24  ;;  %v972_v23 = vshrl.u32 %v2468_v40, 16  ;;  %v976_v24 = vshll.u32 %v2490_v12, 16 }
  0xdb   : > { %v1311_v20 = vpop.f32.mrf.mxu3  ;;  %v1423_v28 = vadd.f32 %v2384_v41, %v1385_v19 }
  0xdd   : > { %v1491_v35 = vmul.f32 0.2, %v1423_v28  ;;  %vm1457_vm10 = vcmp.gt.f32.partialorder %v1423_v28, 0.0 }
  0xde   : > { %v1081_v27 = vpop.f32.mrf.mxu2 }
  0xdf   : > { %v1156_v29 = vadd.f32 %v1081_v27, %v663_v25  ;;  %v529_v30 = vpop.f32.mrf.mxu0  ;;  %v667_v33 = vpop.f32.mrf.mxu1  ;;  %v1525_v45 = vsel %vm1457_vm10, %v1423_v28, %v1491_v35  ;;  %v1220_v25 = vrot.slane %v2490_v12, 1 }
  0xe0   : > { %1921 = vmatmul.msk.bf16.gmra.mxu3 %vm444_vm1, %v1217_v26  ;;  %v666_v37 = vadd.f32 %v665_v15, %v529_v30  ;;  %v415_v15 = vshrl.u32 %v2465_v39, 16  ;;  %v974_v30 = vor.u32 %v972_v23, %v970_v60 }
  0xe1   : > { %v1386_v34 = vadd.f32 %v1311_v20, %v1156_v29  ;;  %v419_v20 = vshll.u32 %v2487_v11, 16 }
  0xe2   : > { %1790 = vmatmul.msk.bf16.gmra.mxu0 %vm444_vm1, %v406_v31  ;;  %v417_v28 = vor.u32 %v415_v15, %v413_v58  ;;  %v978_v31 = vrot.slane %v976_v24, 1 }
  0xe3   : > { %v1424_v36 = vadd.f32 %v2384_v41, %v1386_v34  ;;  %1898 = vmatmul.msk.bf16.gmra.mxu2 %vm444_vm1, %v963_v32  ;;  %v1314_v38 = vpop.f32.mrf.mxu3  ;;  %v421_v29 = vrot.slane %v419_v20, 1 }
  0xe5   : > { %vm1458_vm11 = vcmp.gt.f32.partialorder %v1424_v36, 0.0  ;;  %v1492_v42 = vmul.f32 0.2, %v1424_v36 }
  0xe6   : > { %v1084_v43 = vpop.f32.mrf.mxu2 }
  0xe7   : > { %v1526_v46 = vsel %vm1458_vm11, %v1424_v36, %v1492_v42  ;;  %v1157_v47 = vadd.f32 %v1084_v43, %v666_v37  ;;  %v531_v48 = vpop.f32.mrf.mxu0  ;;  %v670_v51 = vpop.f32.mrf.mxu1 }
  0xe8   : > { %v1988_v50 = vpack.c.bf16 %v1526_v46, %v1525_v45  ;;  %v668_v61 = vadd.f32 %v667_v33, %v531_v48  ;;  %v1221_v33 = vsel %vm1190_vm2, %v1218_v54, %v1220_v25  ;;  %v2512_v48 = vld [vmem:[%s2287_s26 + $0x88] sm:$0xff] }
  0xe9   : > { %v1387_v55 = vadd.f32 %v1314_v38, %v1157_v47  ;;  %v422_v38 = vsel %vm298_vm3, %v417_v28, %v421_v29  ;;  %v2509_v47 = vld [vmem:[%s2287_s26 + $0x80] sm:$0xff] }
  0xea   : > { %2061 = vst [vmem:[%s2408_s4 + $0x18] sm:$0xff] %v1988_v50   ;;  %1812 = vmatmul.msk.bf16.gmra.mxu1 %vm444_vm1, %v2443_v4  ;;  %v971_v4 = vsel %vm298_vm3, %v966_v59, %v970_v60  ;;  %v980_v59 = vshrl.u32 %v2490_v12, 16  ;;  %v984_v60 = vshll.u32 %v2512_v48, 16 }
  0xeb   : > { %v1316_v56 = vpop.f32.mrf.mxu3  ;;  %v1425_v0 = vadd.f32 %v2384_v41, %v1387_v55 }
  0xed   : > { %v1493_v7 = vmul.f32 0.2, %v1425_v0  ;;  %vm1459_vm12 = vcmp.gt.f32.partialorder %v1425_v0, 0.0 }
  0xee   : > { %v1086_v63 = vpop.f32.mrf.mxu2 }
  0xef   : > { %v1158_v1 = vadd.f32 %v1086_v63, %v668_v61  ;;  %v534_v2 = vpop.f32.mrf.mxu0  ;;  %v672_v5 = vpop.f32.mrf.mxu1  ;;  %v1527_v16 = vsel %vm1459_vm12, %v1425_v0, %v1493_v7  ;;  %v1222_v61 = vrot.slane %v2512_v48, 1  ;;  %v764_v7 = vld [vmem:[%s2287_s26 + $0x90] sm:$0x1] }
  0xf0   : > { %1922 = vmatmul.msk.bf16.gmra.mxu3 %vm444_vm1, %v1219_v62  ;;  %v671_v9 = vadd.f32 %v670_v51, %v534_v2  ;;  %v423_v51 = vshrl.u32 %v2487_v11, 16  ;;  %v982_v2 = vor.u32 %v980_v59, %v978_v31 }
  0xf1   : > { %v1388_v6 = vadd.f32 %v1316_v56, %v1158_v1  ;;  %v427_v56 = vshll.u32 %v2509_v47, 16 }
  0xf2   : > { %1791 = vmatmul.msk.bf16.gmra.mxu0 %vm444_vm1, %v414_v3  ;;  %v425_v0 = vor.u32 %v423_v51, %v421_v29  ;;  %v986_v3 = vrot.slane %v984_v60, 1 }
  0xf3   : > { %v1426_v8 = vadd.f32 %v2384_v41, %v1388_v6  ;;  %1899 = vmatmul.msk.bf16.gmra.mxu2 %vm444_vm1, %v971_v4  ;;  %v1319_v10 = vpop.f32.mrf.mxu3  ;;  %v429_v1 = vrot.slane %v427_v56, 1  ;;  %v206_v4 = vld [vmem:[%s2287_s26 + $0x88] sm:$0x1]  ;;  %v1223_v6 = vsel %vm1190_vm2, %v1220_v25, %v1222_v61  ;;  %s2141_s26 = scalar_lea.hbm %s2610_s3, 272 }
  0xf4   : > { %p2143_p1 = scmp.lt.s32.totalorder %s2141_s26, %s2137_s20 }
  0xf5   : > { %vm1460_vm13 = vcmp.gt.f32.partialorder %v1426_v8, 0.0  ;;  %v1494_v13 = vmul.f32 0.2, %v1426_v8 }
  0xf6   : > { %v1089_v14 = vpop.f32.mrf.mxu2  ;;  %p2144_p2 = por %p2143_p1, %p2142_p0 }
  0xf7   : > { %v1528_v17 = vsel %vm1460_vm13, %v1426_v8, %v1494_v13  ;;  %v1159_v18 = vadd.f32 %v1089_v14, %v671_v9  ;;  %v536_v19 = vpop.f32.mrf.mxu0  ;;  %v675_v22 = vpop.f32.mrf.mxu1  ;;  %v430_v13 = vsel %vm298_vm3, %v425_v0, %v429_v1  ;;  %v279_v14 = vunpack.c.l.b16 %v206_v4 }
  0xf8   : > { %v1993_v21 = vpack.c.bf16 %v1528_v17, %v1527_v16  ;;  %v673_v32 = vadd.f32 %v672_v5, %v536_v19  ;;  %v837_v16 = vunpack.c.l.b16 %v764_v7  ;;  %p2145_p3 = pnand %p2144_p2, %p2140_p13 }
  0xf9   : > { %v1389_v26 = vadd.f32 %v1319_v10, %v1159_v18 }
  0xfa   : > { %2062 = vst [vmem:[%s2408_s4 + $0x20] sm:$0xff] %v1993_v21   ;;  %1813 = vmatmul.msk.bf16.gmra.mxu1 %vm444_vm1, %v2465_v39  ;;  %v979_v39 = vsel %vm298_vm3, %v974_v30, %v978_v31  ;;  %v855_v23 = vpack.c.b16 %v837_v16, %v837_v16 }
  0xfb   : > { %v1321_v27 = vpop.f32.mrf.mxu3  ;;  %v1427_v35 = vadd.f32 %v2384_v41, %v1389_v26  ;;  %v431_v26 = vshrl.u32 %v2509_v47, 16 }
  0xfd   : > { %v1495_v43 = vmul.f32 0.2, %v1427_v35  ;;  %vm1461_vm14 = vcmp.gt.f32.partialorder %v1427_v35, 0.0 }
  0xfe   : > { %v1091_v34 = vpop.f32.mrf.mxu2 }
  0xff   : > { %v1160_v36 = vadd.f32 %v1091_v34, %v673_v32  ;;  %v539_v37 = vpop.f32.mrf.mxu0  ;;  %v677_v40 = vpop.f32.mrf.mxu1  ;;  %v1529_v52 = vsel %vm1461_vm14, %v1427_v35, %v1495_v43  ;;  %v988_v34 = vshrl.u32 %v2512_v48, 16  ;;  %v992_v35 = vshll.u32 %v855_v23, 16 }
 0x100   : > { %1923 = vmatmul.msk.bf16.gmra.mxu3 %vm444_vm1, %v1221_v33  ;;  %v676_v45 = vadd.f32 %v675_v22, %v539_v37  ;;  %v297_v22 = vpack.c.b16 %v279_v14, %v279_v14 }
 0x101   : > { %v1390_v42 = vadd.f32 %v1321_v27, %v1160_v36  ;;  %v1224_v36 = vrot.slane %v855_v23, 1  ;;  %v994_v43 = vrot.slane %v992_v35, 1 }
 0x102   : > { %1792 = vmatmul.msk.bf16.gmra.mxu0 %vm444_vm1, %v422_v38  ;;  %v435_v31 = vshll.u32 %v297_v22, 16 }
 0x103   : > { %v1428_v44 = vadd.f32 %v2384_v41, %v1390_v42  ;;  %1900 = vmatmul.msk.bf16.gmra.mxu2 %vm444_vm1, %v979_v39  ;;  %v1324_v46 = vpop.f32.mrf.mxu3  ;;  %v433_v39 = vor.u32 %v431_v26, %v429_v1  ;;  %v990_v42 = vor.u32 %v988_v34, %v986_v3 }
 0x105   : > { %vm1462_vm15 = vcmp.gt.f32.partialorder %v1428_v44, 0.0  ;;  %v1496_v49 = vmul.f32 0.2, %v1428_v44 }
 0x106   : > { %v1094_v50 = vpop.f32.mrf.mxu2 }
 0x107   : > { %v1530_v53 = vsel %vm1462_vm15, %v1428_v44, %v1496_v49  ;;  %v1161_v54 = vadd.f32 %v1094_v50, %v676_v45  ;;  %v541_v55 = vpop.f32.mrf.mxu0  ;;  %v680_v58 = vpop.f32.mrf.mxu1  ;;  %v1225_v45 = vsel %vm1190_vm2, %v1222_v61, %v1224_v36 }
 0x108   : > { %v1998_v57 = vpack.c.bf16 %v1530_v53, %v1529_v52  ;;  %v678_v5 = vadd.f32 %v677_v40, %v541_v55  ;;  %v437_v40 = vrot.slane %v435_v31, 1  ;;  %v995_v52 = vsel %vm298_vm3, %v990_v42, %v994_v43 }
 0x109   : > { %v1391_v62 = vadd.f32 %v1324_v46, %v1161_v54 }
 0x10a   : > { %2063 = vst [vmem:[%s2408_s4 + $0x28] sm:$0xff] %v1998_v57   ;;  %1814 = vmatmul.msk.bf16.gmra.mxu1 %vm444_vm1, %v2487_v11  ;;  %v987_v11 = vsel %vm298_vm3, %v982_v2, %v986_v3  ;;  %v438_v51 = vsel %vm298_vm3, %v433_v39, %v437_v40 }
 0x10b   : > { %v1326_v63 = vpop.f32.mrf.mxu3  ;;  %v1429_v9 = vadd.f32 %v2384_v41, %v1391_v62 }
 0x10d   : > { %v1497_v18 = vmul.f32 0.2, %v1429_v9  ;;  %vm1463_vm0 = vcmp.gt.f32.partialorder %v1429_v9, 0.0 }
 0x10e   : > { %v1096_v8 = vpop.f32.mrf.mxu2 }
 0x10f   : > { %v1162_v10 = vadd.f32 %v1096_v8, %v678_v5  ;;  %v544_v12 = vpop.f32.mrf.mxu0  ;;  %v682_v15 = vpop.f32.mrf.mxu1  ;;  %v1531_v27 = vsel %vm1463_vm0, %v1429_v9, %v1497_v18 }
 0x110   : > { %1924 = vmatmul.msk.bf16.gmra.mxu3 %vm444_vm1, %v1223_v6  ;;  %v681_v20 = vadd.f32 %v680_v58, %v544_v12 }
 0x111   : > { %v1392_v17 = vadd.f32 %v1326_v63, %v1162_v10 }
 0x112   : > { %1793 = vmatmul.msk.bf16.gmra.mxu0 %vm444_vm1, %v430_v13 }
 0x113   : > { %v1430_v19 = vadd.f32 %v2384_v41, %v1392_v17  ;;  %1901 = vmatmul.msk.bf16.gmra.mxu2 %vm444_vm1, %v987_v11  ;;  %v1329_v21 = vpop.f32.mrf.mxu3 }
 0x115   : > { %vm1464_vm4 = vcmp.gt.f32.partialorder %v1430_v19, 0.0  ;;  %v1498_v24 = vmul.f32 0.2, %v1430_v19 }
 0x116   : > { %v1099_v25 = vpop.f32.mrf.mxu2 }
 0x117   : > { %v1532_v28 = vsel %vm1464_vm4, %v1430_v19, %v1498_v24  ;;  %v1163_v29 = vadd.f32 %v1099_v25, %v681_v20  ;;  %v546_v30 = vpop.f32.mrf.mxu0  ;;  %v685_v33 = vpop.f32.mrf.mxu1 }
 0x118   : > { %v2003_v32 = vpack.c.bf16 %v1532_v28, %v1531_v27  ;;  %v683_v44 = vadd.f32 %v682_v15, %v546_v30 }
 0x119   : > { %v1393_v37 = vadd.f32 %v1329_v21, %v1163_v29 }
 0x11a   : > { %2064 = vst [vmem:[%s2408_s4 + $0x30] sm:$0xff] %v2003_v32   ;;  %1815 = vmatmul.msk.bf16.gmra.mxu1 %vm444_vm1, %v2509_v47 }
 0x11b   : > { %v1331_v38 = vpop.f32.mrf.mxu3  ;;  %v1431_v49 = vadd.f32 %v2384_v41, %v1393_v37 }
 0x11d   : > { %v1499_v54 = vmul.f32 0.2, %v1431_v49  ;;  %vm1465_vm2 = vcmp.gt.f32.partialorder %v1431_v49, 0.0 }
 0x11e   : > { %v1101_v46 = vpop.f32.mrf.mxu2 }
 0x11f   : > { %v1164_v50 = vadd.f32 %v1101_v46, %v683_v44  ;;  %v549_v48 = vpop.f32.mrf.mxu0  ;;  %v687_v53 = vpop.f32.mrf.mxu1  ;;  %v1533_v60 = vsel %vm1465_vm2, %v1431_v49, %v1499_v54 }
 0x120   : > { %1925 = vmatmul.msk.bf16.gmra.mxu3 %vm444_vm1, %v1225_v45  ;;  %v686_v56 = vadd.f32 %v685_v33, %v549_v48 }
 0x121   : > { %v1394_v47 = vadd.f32 %v1331_v38, %v1164_v50 }
 0x122   : > { %1794 = vmatmul.msk.bf16.gmra.mxu0 %vm444_vm1, %v438_v51 }
 0x123   : > { %v1432_v55 = vadd.f32 %v2384_v41, %v1394_v47  ;;  %1902 = vmatmul.msk.bf16.gmra.mxu2 %vm444_vm1, %v995_v52  ;;  %v1334_v57 = vpop.f32.mrf.mxu3 }
 0x125   : > { %vm1466_vm5 = vcmp.gt.f32.partialorder %v1432_v55, 0.0  ;;  %v1500_v58 = vmul.f32 0.2, %v1432_v55 }
 0x126   : > { %v1104_v59 = vpop.f32.mrf.mxu2 }
 0x127   : > { %v1534_v61 = vsel %vm1466_vm5, %v1432_v55, %v1500_v58  ;;  %v1165_v62 = vadd.f32 %v1104_v59, %v686_v56  ;;  %v551_v63 = vpop.f32.mrf.mxu0  ;;  %v690_v1 = vpop.f32.mrf.mxu1 }
 0x128   : > { %v2008_v0 = vpack.c.bf16 %v1534_v61, %v1533_v60  ;;  %v688_v4 = vadd.f32 %v687_v53, %v551_v63 }
 0x129   : > { %v1395_v2 = vadd.f32 %v1334_v57, %v1165_v62 }
 0x12a   : > { %2065 = vst [vmem:[%s2408_s4 + $0x38] sm:$0xff] %v2008_v0  }
 0x12b   : > { %v1336_v3 = vpop.f32.mrf.mxu3  ;;  %v1433_v6 = vadd.f32 %v2384_v41, %v1395_v2 }
 0x12d   : > { %v1501_v12 = vmul.f32 0.2, %v1433_v6  ;;  %vm1467_vm1 = vcmp.gt.f32.partialorder %v1433_v6, 0.0 }
 0x12e   : > { %v1106_v5 = vpop.f32.mrf.mxu2 }
 0x12f   : > { %v1166_v7 = vadd.f32 %v1106_v5, %v688_v4  ;;  %v554_v8 = vpop.f32.mrf.mxu0  ;;  %v692_v9 = vpop.f32.mrf.mxu1  ;;  %v1535_v17 = vsel %vm1467_vm1, %v1433_v6, %v1501_v12 }
 0x130   : > { %v691_v14 = vadd.f32 %v690_v1, %v554_v8 }
 0x131   : > { %v1396_v10 = vadd.f32 %v1336_v3, %v1166_v7 }
 0x133   : > { %v1434_v13 = vadd.f32 %v2384_v41, %v1396_v10  ;;  %v1339_v11 = vpop.f32.mrf.mxu3 }
 0x135   : > { %vm1468_vm3 = vcmp.gt.f32.partialorder %v1434_v13, 0.0  ;;  %v1502_v15 = vmul.f32 0.2, %v1434_v13 }
 0x136   : > { %v1109_v16 = vpop.f32.mrf.mxu2 }
 0x137   : > { %v1536_v18 = vsel %vm1468_vm3, %v1434_v13, %v1502_v15  ;;  %v1167_v19 = vadd.f32 %v1109_v16, %v691_v14  ;;  %v556_v20 = vpop.f32.mrf.mxu0  ;;  %v695_v22 = vpop.f32.mrf.mxu1 }
 0x138   : > { %v2013_v21 = vpack.c.bf16 %v1536_v18, %v1535_v17  ;;  %v693_v25 = vadd.f32 %v692_v9, %v556_v20 }
 0x139   : > { %v1397_v23 = vadd.f32 %v1339_v11, %v1167_v19 }
 0x13a   : > { %2066 = vst [vmem:[%s2408_s4 + $0x40] sm:$0xff] %v2013_v21  }
 0x13b   : > { %v1341_v24 = vpop.f32.mrf.mxu3  ;;  %v1435_v27 = vadd.f32 %v2384_v41, %v1397_v23 }
 0x13d   : > { %v1503_v32 = vmul.f32 0.2, %v1435_v27  ;;  %vm1469_vm6 = vcmp.gt.f32.partialorder %v1435_v27, 0.0 }
 0x13e   : > { %v1111_v26 = vpop.f32.mrf.mxu2 }
 0x13f   : > { %v1168_v28 = vadd.f32 %v1111_v26, %v693_v25  ;;  %v559_v29 = vpop.f32.mrf.mxu0  ;;  %v697_v30 = vpop.f32.mrf.mxu1  ;;  %v1537_v38 = vsel %vm1469_vm6, %v1435_v27, %v1503_v32 }
 0x140   : > { %v696_v34 = vadd.f32 %v695_v22, %v559_v29 }
 0x141   : > { %v1398_v31 = vadd.f32 %v1341_v24, %v1168_v28 }
 0x143   : > { %v1436_v33 = vadd.f32 %v2384_v41, %v1398_v31  ;;  %v1344_v35 = vpop.f32.mrf.mxu3 }
 0x145   : > { %vm1470_vm7 = vcmp.gt.f32.partialorder %v1436_v33, 0.0  ;;  %v1504_v36 = vmul.f32 0.2, %v1436_v33 }
 0x146   : > { %v1114_v37 = vpop.f32.mrf.mxu2 }
 0x147   : > { %v1538_v39 = vsel %vm1470_vm7, %v1436_v33, %v1504_v36  ;;  %v1169_v40 = vadd.f32 %v1114_v37, %v696_v34  ;;  %v561_v42 = vpop.f32.mrf.mxu0  ;;  %v700_v44 = vpop.f32.mrf.mxu1 }
 0x148   : > { %v2018_v43 = vpack.c.bf16 %v1538_v39, %v1537_v38  ;;  %v698_v49 = vadd.f32 %v697_v30, %v561_v42 }
 0x149   : > { %v1399_v45 = vadd.f32 %v1344_v35, %v1169_v40 }
 0x14a   : > { %2067 = vst [vmem:[%s2408_s4 + $0x48] sm:$0xff] %v2018_v43  }
 0x14b   : > { %v1346_v46 = vpop.f32.mrf.mxu3  ;;  %v1437_v48 = vadd.f32 %v2384_v41, %v1399_v45 }
 0x14d   : > { %v1505_v54 = vmul.f32 0.2, %v1437_v48  ;;  %vm1471_vm8 = vcmp.gt.f32.partialorder %v1437_v48, 0.0 }
 0x14e   : > { %v1116_v50 = vpop.f32.mrf.mxu2 }
 0x14f   : > { %v1170_v51 = vadd.f32 %v1116_v50, %v698_v49  ;;  %v564_v52 = vpop.f32.mrf.mxu0  ;;  %v702_v53 = vpop.f32.mrf.mxu1  ;;  %v1539_v60 = vsel %vm1471_vm8, %v1437_v48, %v1505_v54 }
 0x150   : > { %v701_v56 = vadd.f32 %v700_v44, %v564_v52 }
 0x151   : > { %v1400_v47 = vadd.f32 %v1346_v46, %v1170_v51 }
 0x153   : > { %v1438_v55 = vadd.f32 %v2384_v41, %v1400_v47  ;;  %v1349_v57 = vpop.f32.mrf.mxu3 }
 0x155   : > { %vm1472_vm9 = vcmp.gt.f32.partialorder %v1438_v55, 0.0  ;;  %v1506_v58 = vmul.f32 0.2, %v1438_v55 }
 0x156   : > { %v1119_v59 = vpop.f32.mrf.mxu2 }
 0x157   : > { %v1540_v61 = vsel %vm1472_vm9, %v1438_v55, %v1506_v58  ;;  %v1171_v62 = vadd.f32 %v1119_v59, %v701_v56  ;;  %v566_v63 = vpop.f32.mrf.mxu0  ;;  %v705_v1 = vpop.f32.mrf.mxu1 }
 0x158   : > { %v2023_v0 = vpack.c.bf16 %v1540_v61, %v1539_v60  ;;  %v703_v4 = vadd.f32 %v702_v53, %v566_v63 }
 0x159   : > { %v1401_v2 = vadd.f32 %v1349_v57, %v1171_v62 }
 0x15a   : > { %2068 = vst [vmem:[%s2408_s4 + $0x50] sm:$0xff] %v2023_v0  }
 0x15b   : > { %v1351_v3 = vpop.f32.mrf.mxu3  ;;  %v1439_v6 = vadd.f32 %v2384_v41, %v1401_v2 }
 0x15d   : > { %v1507_v12 = vmul.f32 0.2, %v1439_v6  ;;  %vm1473_vm10 = vcmp.gt.f32.partialorder %v1439_v6, 0.0 }
 0x15e   : > { %v1121_v5 = vpop.f32.mrf.mxu2 }
 0x15f   : > { %v1172_v7 = vadd.f32 %v1121_v5, %v703_v4  ;;  %v569_v8 = vpop.f32.mrf.mxu0  ;;  %v707_v9 = vpop.f32.mrf.mxu1  ;;  %v1541_v17 = vsel %vm1473_vm10, %v1439_v6, %v1507_v12 }
 0x160   : > { %v706_v14 = vadd.f32 %v705_v1, %v569_v8 }
 0x161   : > { %v1402_v10 = vadd.f32 %v1351_v3, %v1172_v7 }
 0x163   : > { %v1440_v13 = vadd.f32 %v2384_v41, %v1402_v10  ;;  %v1354_v11 = vpop.f32.mrf.mxu3 }
 0x165   : > { %vm1474_vm11 = vcmp.gt.f32.partialorder %v1440_v13, 0.0  ;;  %v1508_v15 = vmul.f32 0.2, %v1440_v13 }
 0x166   : > { %v1124_v16 = vpop.f32.mrf.mxu2 }
 0x167   : > { %v1542_v18 = vsel %vm1474_vm11, %v1440_v13, %v1508_v15  ;;  %v1173_v19 = vadd.f32 %v1124_v16, %v706_v14  ;;  %v571_v20 = vpop.f32.mrf.mxu0  ;;  %v710_v22 = vpop.f32.mrf.mxu1 }
 0x168   : > { %v2028_v21 = vpack.c.bf16 %v1542_v18, %v1541_v17  ;;  %v708_v25 = vadd.f32 %v707_v9, %v571_v20 }
 0x169   : > { %v1403_v23 = vadd.f32 %v1354_v11, %v1173_v19 }
 0x16a   : > { %2069 = vst [vmem:[%s2408_s4 + $0x58] sm:$0xff] %v2028_v21  }
 0x16b   : > { %v1356_v24 = vpop.f32.mrf.mxu3  ;;  %v1441_v27 = vadd.f32 %v2384_v41, %v1403_v23 }
 0x16d   : > { %v1509_v32 = vmul.f32 0.2, %v1441_v27  ;;  %vm1475_vm12 = vcmp.gt.f32.partialorder %v1441_v27, 0.0 }
 0x16e   : > { %v1126_v26 = vpop.f32.mrf.mxu2 }
 0x16f   : > { %v1174_v28 = vadd.f32 %v1126_v26, %v708_v25  ;;  %v574_v29 = vpop.f32.mrf.mxu0  ;;  %v712_v30 = vpop.f32.mrf.mxu1  ;;  %v1543_v38 = vsel %vm1475_vm12, %v1441_v27, %v1509_v32  ;;  %v2120_v32 = vld [vmem:[%s2609_s2] ss:$0 sm:$0xff] }
 0x170   : > { %v711_v34 = vadd.f32 %v710_v22, %v574_v29 }
 0x171   : > { %v1404_v31 = vadd.f32 %v1356_v24, %v1174_v28 }
 0x173   : > { %v1442_v33 = vadd.f32 %v2384_v41, %v1404_v31  ;;  %v1359_v35 = vpop.f32.mrf.mxu3 }
 0x175   : > { %vm1476_vm13 = vcmp.gt.f32.partialorder %v1442_v33, 0.0  ;;  %v1510_v36 = vmul.f32 0.2, %v1442_v33 }
 0x176   : > { %v1129_v37 = vpop.f32.mrf.mxu2 }
 0x177   : > { %v1544_v39 = vsel %vm1476_vm13, %v1442_v33, %v1510_v36  ;;  %v1175_v40 = vadd.f32 %v1129_v37, %v711_v34  ;;  %v576_v42 = vpop.f32.mrf.mxu0  ;;  %v715_v44 = vpop.f32.mrf.mxu1 }
 0x178   : > { %v2033_v43 = vpack.c.bf16 %v1544_v39, %v1543_v38  ;;  %v713_v49 = vadd.f32 %v712_v30, %v576_v42 }
 0x179   : > { %v1405_v45 = vadd.f32 %v1359_v35, %v1175_v40 }
 0x17a   : > { %2070 = vst [vmem:[%s2408_s4 + $0x60] sm:$0xff] %v2033_v43  }
 0x17b   : > { %v1361_v46 = vpop.f32.mrf.mxu3  ;;  %v1443_v48 = vadd.f32 %v2384_v41, %v1405_v45 }
 0x17d   : > { %v1511_v47 = vmul.f32 0.2, %v1443_v48  ;;  %vm1477_vm14 = vcmp.gt.f32.partialorder %v1443_v48, 0.0 }
 0x17e   : > { %v1131_v50 = vpop.f32.mrf.mxu2 }
 0x17f   : > { %v1176_v51 = vadd.f32 %v1131_v50, %v713_v49  ;;  %v579_v52 = vpop.f32.mrf.mxu0  ;;  %v717_v57 = vpop.f32.mrf.mxu1  ;;  %v1545_v60 = vsel %vm1477_vm14, %v1443_v48, %v1511_v47 }
 0x180   : > { %v716_v55 = vadd.f32 %v715_v44, %v579_v52 }
 0x181   : > { %v1406_v53 = vadd.f32 %v1361_v46, %v1176_v51 }
 0x183   : > { %v1444_v54 = vadd.f32 %v2384_v41, %v1406_v53  ;;  %v1364_v56 = vpop.f32.mrf.mxu3 }
 0x185   : > { %vm1478_vm15 = vcmp.gt.f32.partialorder %v1444_v54, 0.0  ;;  %v1512_v58 = vmul.f32 0.2, %v1444_v54 }
 0x186   : > { %v1134_v59 = vpop.f32.mrf.mxu2 }
 0x187   : > { %v1546_v61 = vsel %vm1478_vm15, %v1444_v54, %v1512_v58  ;;  %v1177_v62 = vadd.f32 %v1134_v59, %v716_v55  ;;  %v581_v63 = vpop.f32.mrf.mxu0  ;;  %v720_v4 = vpop.f32.mrf.mxu1 }
 0x188   : > { %v2038_v0 = vpack.c.bf16 %v1546_v61, %v1545_v60  ;;  %v718_v3 = vadd.f32 %v717_v57, %v581_v63 }
 0x189   : > { %v1407_v1 = vadd.f32 %v1364_v56, %v1177_v62 }
 0x18a   : > { %2071 = vst [vmem:[%s2408_s4 + $0x68] sm:$0xff] %v2038_v0  }
 0x18b   : > { %v1366_v2 = vpop.f32.mrf.mxu3  ;;  %v1445_v6 = vadd.f32 %v2384_v41, %v1407_v1 }
 0x18d   : > { %v1513_v10 = vmul.f32 0.2, %v1445_v6  ;;  %vm1479_vm0 = vcmp.gt.f32.partialorder %v1445_v6, 0.0 }
 0x18e   : > { %v1136_v5 = vpop.f32.mrf.mxu2 }
 0x18f   : > { %v1178_v7 = vadd.f32 %v1136_v5, %v718_v3  ;;  %v584_v8 = vpop.f32.mrf.mxu0  ;;  %v1547_v16 = vsel %vm1479_vm0, %v1445_v6, %v1513_v10  ;;  %v722_v21 = vpop.f32.mrf.mxu1 }
 0x190   : > { %v721_v13 = vadd.f32 %v720_v4, %v584_v8 }
 0x191   : > { %v1408_v9 = vadd.f32 %v1366_v2, %v1178_v7 }
 0x193   : > { %v1446_v12 = vadd.f32 %v2384_v41, %v1408_v9  ;;  %v1369_v14 = vpop.f32.mrf.mxu3 }
 0x195   : > { %vm1480_vm4 = vcmp.gt.f32.partialorder %v1446_v12, 0.0  ;;  %v1514_v11 = vmul.f32 0.2, %v1446_v12 }
 0x196   : > { %v1139_v15 = vpop.f32.mrf.mxu2 }
 0x197   : > { %v1548_v17 = vsel %vm1480_vm4, %v1446_v12, %v1514_v11  ;;  %v1179_v18 = vadd.f32 %v1139_v15, %v721_v13  ;;  %v586_v19 = vpop.f32.mrf.mxu0  ;;  %v725_v30 = vpop.f32.mrf.mxu1 }
 0x198   : > { %v2043_v20 = vpack.c.bf16 %v1548_v17, %v1547_v16  ;;  %v723_v24 = vadd.f32 %v722_v21, %v586_v19 }
 0x199   : > { %v1409_v22 = vadd.f32 %v1369_v14, %v1179_v18 }
 0x19a   : > { %2072 = vst [vmem:[%s2408_s4 + $0x70] sm:$0xff] %v2043_v20  }
 0x19b   : > { %v1371_v23 = vpop.f32.mrf.mxu3  ;;  %v1447_v26 = vadd.f32 %v2384_v41, %v1409_v22 }
 0x19d   : > { %v1515_v31 = vmul.f32 0.2, %v1447_v26  ;;  %vm1481_vm2 = vcmp.gt.f32.partialorder %v1447_v26, 0.0 }
 0x19e   : > { %v1141_v25 = vpop.f32.mrf.mxu2 }
 0x19f   : > { %v1180_v27 = vadd.f32 %v1141_v25, %v723_v24  ;;  %v589_v28 = vpop.f32.mrf.mxu0  ;;  %v1549_v38 = vsel %vm1481_vm2, %v1447_v26, %v1515_v31  ;;  %v727_v44 = vpop.f32.mrf.mxu1 }
 0x1a0   : > { %v726_v34 = vadd.f32 %v725_v30, %v589_v28 }
 0x1a1   : > { %v1410_v29 = vadd.f32 %v1371_v23, %v1180_v27 }
 0x1a3   : > { %v1448_v33 = vadd.f32 %v2120_v32, %v1410_v29  ;;  %v1374_v36 = vpop.f32.mrf.mxu3 }
 0x1a5   : > { %vm1482_vm5 = vcmp.gt.f32.partialorder %v1448_v33, 0.0  ;;  %v1516_v35 = vmul.f32 0.2, %v1448_v33 }
 0x1a6   : > { %v1144_v37 = vpop.f32.mrf.mxu2 }
 0x1a7   : > { %v1550_v41 = vsel %vm1482_vm5, %v1448_v33, %v1516_v35  ;;  %v1181_v39 = vadd.f32 %v1144_v37, %v726_v34  ;;  %v591_v42 = vpop.f32.mrf.mxu0 }
 0x1a8   : > { %v2048_v40 = vpack.c.bf16 %v1550_v41, %v1549_v38  ;;  %v728_v45 = vadd.f32 %v727_v44, %v591_v42 }
 0x1a9   : > { %v1411_v43 = vadd.f32 %v1374_v36, %v1181_v39 }
 0x1aa   : > { %2073 = vst [vmem:[%s2408_s4 + $0x78] sm:$0xff] %v2048_v40  }
 0x1ab   : > { %v1449_v49 = vadd.f32 %v2120_v32, %v1411_v43  ;;  %v1376_v48 = vpop.f32.mrf.mxu3 }
 0x1ad   : > { %v1517_v52 = vmul.f32 0.2, %v1449_v49  ;;  %vm1483_vm1 = vcmp.gt.f32.partialorder %v1449_v49, 0.0 }
 0x1ae   : > { %v1146_v46 = vpop.f32.mrf.mxu2 }
 0x1af   : > { %v1182_v50 = vadd.f32 %v1146_v46, %v728_v45  ;;  %v1551_v54 = vsel %vm1483_vm1, %v1449_v49, %v1517_v52 }
 0x1b1   : > { %v1412_v51 = vadd.f32 %v1376_v48, %v1182_v50 }
 0x1b3   : > { %v1450_v53 = vadd.f32 %v2120_v32, %v1412_v51 }
 0x1b5   : > { %vm1484_vm3 = vcmp.gt.f32.partialorder %v1450_v53, 0.0  ;;  %v1518_v47 = vmul.f32 0.2, %v1450_v53 }
 0x1b7   : > { %v1552_v55 = vsel %vm1484_vm3, %v1450_v53, %v1518_v47 }
 0x1b8   : > { %v2053_v56 = vpack.c.bf16 %v1552_v55, %v1551_v54 }
 0x1ba   : > { %2074 = vst [vmem:[%s2408_s4 + $0x80] sm:$0xff] %v2053_v56  }
 0x1bb   : > { %2148 = shalt.err (!%p2145_p3)
}
 0x1bc   : > { %s2185_s29 = smov 64   ;;  %s2186_s30 = smov 4  }
 0x1bd   : > { %2078 = dma.vmem_to_hbm [thread:$0]  (%p2245_p5), %s1635_s11, 2176, %s1637_s17, %s1622_s16, %s2185_s29, %s2185_s29, %s2186_s30  }
 0x1be PF: > { %p2084_p4 = scmp.ge.s32.totalorder %s2183_s15, 2  ;;  %s1651_s4 = sand.u32 1, %s2171_s12  }
 0x1bf   : > { %s1652_s5 = scalar_lea.sflag [#allocation3], %s1651_s4 }
 0x1c0   : > { %p2081_p7 = pnand %p2084_p4, %p2249_p6 }
 0x1c2   : > { %p2082_p8 = pneg %p2081_p7 }
 0x1c4   : > { %2166 = dma.done.wait (%p2082_p8), %s1652_s5, 2176  }
 0x1c5   : > { %2168 = vsyncadd (%p2082_p8), %s1652_s5, 4294965120  ;;  %p13_p9 = scmp.ge.s32.totalorder %s2232_s18, 4   ;;  %s2613_s12 = smov %s2175_s13 }
 0x1c6   : > { %s2614_s13 = smov %s2179_s14  ;;  %s2615_s14 = smov %s2243_s21 }
 0x1c7   : > { %s2616_s15 = smov %s2232_s18  ;;  %15 = sbr.rel (!%p13_p9) target bundleno = 3 (0x3), region = 70 }
 0x1cc   :  { %1658 = vsyncpa [#allocation3], 1 }
 0x1cd   :  { %1660 = vsyncpa [#allocation3 + $0x1], 1 }

</bundles_post_ra>
